<compile_context>
chip_gen: v7x
topology: tpu7x:2x2x1
jax: 0.10.0
libtpu: 0.0.40
codegen_flags: <defaults>
</compile_context>

<pallas_src>
import functools

import jax
import jax.numpy as jnp
from jax import lax
from jax.experimental import pallas as pl
from jax.experimental.pallas import tpu as pltpu

THRESHOLD = 0.5
LANE = 128
SUB = 8                       # f32 accumulator sublanes
TILE_ROWS = 8192              # multiple of 32 -> legal for all input dtypes
VMEM_LIMIT = 48 * 1024 * 1024  # covers 16 MiB pipeline footprint on every gen


def _round_up(x, m):
    return ((x + m - 1) // m) * m


def _sublane_multiple(dtype):
    # (sublane, 128) packing is dtype dependent: 8 for 4-byte, 16 for 2-byte,
    # 32 for 1-byte elements.
    return max(8, 32 // jnp.dtype(dtype).itemsize)


def _accuracy_kernel(pr_ref, gt_ref, out_ref, *, rows, tr, bpc, blocks_total,
                     threshold):
    c = pl.program_id(0)          # core split (CORE_PARALLEL when num_splits>1)
    k = pl.program_id(1)          # reduction axis (last, "arbitrary")
    block_idx = c * bpc + k

    # Output block is resident across k -> it is the accumulator.
    @pl.when(k == 0)
    def _():
        out_ref[...] = jnp.zeros_like(out_ref)

    # Threshold + match; kept boolean until the single cast in _accumulate.
    pred = (pr_ref[...] > threshold).astype(gt_ref.dtype)
    eq = gt_ref[...] == pred                     # bool (tr, LANE)

    # Last real block (possibly partial) or a clamped duplicate from the split.
    is_edge = block_idx >= blocks_total - 1

    def _accumulate(match_bool):
        # VPU-only partial reduction: (tr,128) -> (8,128) via vreg adds.
        partial = match_bool.astype(jnp.float32).reshape(
            tr // SUB, SUB, LANE).sum(axis=0)
        out_ref[...] += partial[None]

    # Fast path: full interior tile, no masking work.
    @pl.when(jnp.logical_not(is_edge))
    def _():
        _accumulate(eq)

    # Slow path: mask rows past the valid extent (partial last tile and
    # clamped duplicate tiles contribute zero).
    @pl.when(is_edge)
    def _():
        row_start = block_idx * tr
        row_ids = lax.broadcasted_iota(jnp.int32, (tr, LANE), 0) + row_start
        _accumulate(jnp.logical_and(eq, row_ids < rows))


def _accuracy_jnp(pr_flat, gt_flat, threshold, n):
    # Fused XLA compare+reduce fallback (unaligned or tiny inputs).
    pred = (pr_flat > threshold).astype(gt_flat.dtype)
    count = jnp.sum((gt_flat == pred).astype(jnp.int32))
    return count.astype(jnp.float32) / jnp.float32(n)


def accuracy_metric(y_pr, y_gt, threshold=THRESHOLD, ignore_channels=None,
                    tile_rows=TILE_ROWS, num_splits=1):
    """Accuracy = mean((y_pr > threshold) == y_gt). Returns a scalar f32."""
    assert y_pr.shape == y_gt.shape
    # TODO(synk): non-identity activations (sigmoid/softmax/argmax/...) of the
    # Activation wrapper are not implemented; default activation=None is identity.
    if ignore_channels is not None:
        keep = [ch for ch in range(y_pr.shape[1]) if ch not in ignore_channels]
        y_pr = y_pr[:, keep]
        y_gt = y_gt[:, keep]

    n = y_pr.size
    pr_flat = y_pr.reshape(-1)
    gt_flat = y_gt.reshape(-1)

    m = max(_sublane_multiple(pr_flat.dtype), _sublane_multiple(gt_flat.dtype))
    rows = n // LANE

    if n % LANE != 0 or rows < m:
        # Unaligned sizes: feeding a (rows,128) kernel would require a prefix
        # slice copy of ~the whole tensor (extra HBM read+write of both
        # inputs). The fused XLA reduce is strictly cheaper, and tiny inputs
        # are not worth a kernel launch.
        return _accuracy_jnp(pr_flat, gt_flat, threshold, n)

    pr2d = pr_flat.reshape(rows, LANE)   # free: contiguous row-major views
    gt2d = gt_flat.reshape(rows, LANE)

    # Tile rows: multiple of the dtype-specific sublane packing, never larger
    # than the array (only the standard partial *last* block remains).
    tr = (min(tile_rows, rows) // m) * m
    blocks_total = pl.cdiv(rows, tr)

    # Core split: only useful on dual-TensorCore chips (v7x). v5e/v6e: keep 1
    # so no duplicate-tile DMAs are issued.
    nc = max(1, min(num_splits, blocks_total))
    bpc = pl.cdiv(blocks_total, nc)
    if nc > 1:
        dim_sem = (pltpu.CORE_PARALLEL, pltpu.ARBITRARY)
    else:
        dim_sem = ("arbitrary", "arbitrary")

    def in_map(c, k):
        # Clamp so every DMA stays in-bounds; clamped duplicates are masked
        # inside the kernel (their block_idx >= blocks_total).
        return (jnp.minimum(c * bpc + k, blocks_total - 1), 0)

    out = pl.pallas_call(
        functools.partial(_accuracy_kernel, rows=rows, tr=tr, bpc=bpc,
                          blocks_total=blocks_total, threshold=threshold),
        out_shape=jax.ShapeDtypeStruct((nc, SUB, LANE), jnp.float32),
        grid_spec=pltpu.PrefetchScalarGridSpec(
            num_scalar_prefetch=0,
            grid=(nc, bpc),
            in_specs=[
                pl.BlockSpec((tr, LANE), in_map),
                pl.BlockSpec((tr, LANE), in_map),
            ],
            out_specs=pl.BlockSpec((1, SUB, LANE), lambda c, k: (c, 0, 0)),
        ),
        compiler_params=pltpu.CompilerParams(
            dimension_semantics=dim_sem,
            vmem_limit_bytes=VMEM_LIMIT),
    )(pr2d, gt2d)

    # Per-entry partial counts are exact integer-valued f32 (< 2^24); an int32
    # final sum keeps the total count exact for n < 2^31.
    count = jnp.sum(out.astype(jnp.int32))
    return count.astype(jnp.float32) / jnp.float32(n)


def accuracy_reference(y_pr, y_gt, threshold=THRESHOLD):
    pr = (y_pr > threshold).astype(jnp.float32)
    gt = y_gt.astype(jnp.float32)
    tp = jnp.sum((gt == pr).astype(jnp.float32))
    return tp / jnp.float32(y_gt.size)


def _make_inputs(key, shape):
    k1, k2 = jax.random.split(key)
    y_pr = jax.random.uniform(k1, shape, dtype=jnp.float32)
    y_gt = (jax.random.uniform(k2, shape, dtype=jnp.float32) > 0.5).astype(
        jnp.float32)
    return y_pr, y_gt


if __name__ == "__main__":
    key = jax.random.PRNGKey(0)
    keys = jax.random.split(key, 4)

    # 1) Primary case: NCHW (2, 4, 16, 16) -> 2048 elements, single full block.
    y_pr, y_gt = _make_inputs(keys[0], (2, 4, 16, 16))
    score = accuracy_metric(y_pr, y_gt)
    jax.block_until_ready(score)
    ref = accuracy_reference(y_pr, y_gt)
    assert jnp.allclose(score, ref, rtol=1e-6, atol=1e-6), (score, ref)

    # 2) Multi-block with a partial last tile: rows=12, tr=8 -> fast + masked paths.
    y_pr, y_gt = _make_inputs(keys[1], (2, 3, 8, 32))
    score = accuracy_metric(y_pr, y_gt)
    jax.block_until_ready(score)
    ref = accuracy_reference(y_pr, y_gt)
    assert jnp.allclose(score, ref, rtol=1e-6, atol=1e-6), (score, ref)

    # 3) Many full interior tiles: rows=64 with tile_rows=8 -> 8 grid steps.
    y_pr, y_gt = _make_inputs(keys[2], (2, 4, 32, 32))
    score = accuracy_metric(y_pr, y_gt, tile_rows=8)
    jax.block_until_ready(score)
    ref = accuracy_reference(y_pr, y_gt)
    assert jnp.allclose(score, ref, rtol=1e-6, atol=1e-6), (score, ref)

    # 4) Unaligned size (n % 128 != 0) -> copy-free fused fallback path.
    y_pr, y_gt = _make_inputs(keys[3], (1, 2, 5, 7))
    score = accuracy_metric(y_pr, y_gt)
    jax.block_until_ready(score)
    ref = accuracy_reference(y_pr, y_gt)
    assert jnp.allclose(score, ref, rtol=1e-6, atol=1e-6), (score, ref)

    print("KERNEL_OK")
</pallas_src>

<mosaic_0001>
module attributes {stable_mosaic.version = 11 : i64} {
  func.func @_accuracy_kernel(%arg0: i32, %arg1: i32, %arg2: memref<16x128xf32, #tpu.memory_space<vmem>>, %arg3: memref<16x128xf32, #tpu.memory_space<vmem>>, %arg4: memref<1x8x128xf32, #tpu.memory_space<vmem>>) attributes {dimension_semantics = [#tpu.dimension_semantics<arbitrary>, #tpu.dimension_semantics<arbitrary>], iteration_bounds = array<i64: 1, 1>, scalar_prefetch = 0 : i64, scratch_operands = 0 : i64, tpu.core_type = #tpu.core_type<tc>, window_params = [{transform_indices = @transform_0, window_bounds = array<i64: 16, 128>}, {transform_indices = @transform_1, window_bounds = array<i64: 16, 128>}, {transform_indices = @transform_2, window_bounds = array<i64: 1, 8, 128>}]} {
    %c1_i32 = arith.constant 1 : i32
    %0 = arith.muli %arg0, %c1_i32 : i32
    %1 = arith.addi %0, %arg1 : i32
    %c0_i32 = arith.constant 0 : i32
    %2 = arith.cmpi eq, %arg1, %c0_i32 : i32
    %3 = arith.extui %2 : i1 to i32
    %c0_i32_0 = arith.constant 0 : i32
    %4 = arith.cmpi ne, %3, %c0_i32_0 : i32
    scf.if %4 {
      %cst_7 = arith.constant 0.000000e+00 : f32
      %18 = vector.broadcast %cst_7 : f32 to vector<1x8x128xf32>
      %c0_8 = arith.constant 0 : index
      %c0_9 = arith.constant 0 : index
      %c0_10 = arith.constant 0 : index
      %19 = vector.load %arg4[%c0_8, %c0_9, %c0_10] : memref<1x8x128xf32, #tpu.memory_space<vmem>>, vector<1x8x128xf32>
      tpu.vector_store %arg4[%c0_8, %c0_9, %c0_10], %18 {strides = array<i32>} : memref<1x8x128xf32, #tpu.memory_space<vmem>>, vector<1x8x128xf32>,
    } else {
    }
    %c0 = arith.constant 0 : index
    %c0_1 = arith.constant 0 : index
    %5 = vector.load %arg2[%c0, %c0_1] : memref<16x128xf32, #tpu.memory_space<vmem>>, vector<16x128xf32>
    %cst = arith.constant 5.000000e-01 : f32
    %6 = vector.broadcast %cst : f32 to vector<16x128xf32>
    %7 = arith.cmpf ogt, %5, %6 : vector<16x128xf32>
    %8 = arith.extui %7 : vector<16x128xi1> to vector<16x128xi32>
    %9 = arith.sitofp %8 : vector<16x128xi32> to vector<16x128xf32>
    %c0_2 = arith.constant 0 : index
    %c0_3 = arith.constant 0 : index
    %10 = vector.load %arg3[%c0_2, %c0_3] : memref<16x128xf32, #tpu.memory_space<vmem>>, vector<16x128xf32>
    %11 = arith.cmpf oeq, %10, %9 : vector<16x128xf32>
    %c0_i32_4 = arith.constant 0 : i32
    %12 = arith.cmpi sge, %1, %c0_i32_4 : i32
    %true = arith.constant true
    %13 = arith.xori %12, %true : i1
    %14 = arith.extui %13 : i1 to i32
    %c0_i32_5 = arith.constant 0 : i32
    %15 = arith.cmpi ne, %14, %c0_i32_5 : i32
    scf.if %15 {
      %18 = arith.extui %11 : vector<16x128xi1> to vector<16x128xi32>
      %19 = arith.sitofp %18 : vector<16x128xi32> to vector<16x128xf32>
      %20 = vector.shape_cast %19 : vector<16x128xf32> to vector<2x8x128xf32>
      %cst_7 = arith.constant dense<0.000000e+00> : vector<8x128xf32>
      %21 = vector.multi_reduction <add>, %20, %cst_7 [0] : vector<2x8x128xf32> to vector<8x128xf32>
      %c0_8 = arith.constant 0 : index
      %c0_9 = arith.constant 0 : index
      %c0_10 = arith.constant 0 : index
      %22 = vector.load %arg4[%c0_8, %c0_9, %c0_10] : memref<1x8x128xf32, #tpu.memory_space<vmem>>, vector<1x8x128xf32>
      %23 = vector.shape_cast %21 : vector<8x128xf32> to vector<1x8x128xf32>
      %24 = arith.addf %22, %23 : vector<1x8x128xf32>
      %c0_11 = arith.constant 0 : index
      %c0_12 = arith.constant 0 : index
      %c0_13 = arith.constant 0 : index
      %25 = vector.load %arg4[%c0_11, %c0_12, %c0_13] : memref<1x8x128xf32, #tpu.memory_space<vmem>>, vector<1x8x128xf32>
      tpu.vector_store %arg4[%c0_11, %c0_12, %c0_13], %24 {strides = array<i32>} : memref<1x8x128xf32, #tpu.memory_space<vmem>>, vector<1x8x128xf32>,
    } else {
    }
    %16 = arith.extui %12 : i1 to i32
    %c0_i32_6 = arith.constant 0 : i32
    %17 = arith.cmpi ne, %16, %c0_i32_6 : i32
    scf.if %17 {
      %c16_i32 = arith.constant 16 : i32
      %18 = arith.muli %1, %c16_i32 : i32
      %19 = tpu.iota {dimensions = array<i32: 0>} : vector<16x128xi32>
      %20 = vector.broadcast %18 : i32 to vector<16x128xi32>
      %21 = arith.addi %19, %20 : vector<16x128xi32>
      %c16_i32_7 = arith.constant 16 : i32
      %22 = vector.broadcast %c16_i32_7 : i32 to vector<16x128xi32>
      %23 = arith.cmpi slt, %21, %22 : vector<16x128xi32>
      %24 = arith.andi %11, %23 : vector<16x128xi1>
      %25 = arith.extui %24 : vector<16x128xi1> to vector<16x128xi32>
      %26 = arith.sitofp %25 : vector<16x128xi32> to vector<16x128xf32>
      %27 = vector.shape_cast %26 : vector<16x128xf32> to vector<2x8x128xf32>
      %cst_8 = arith.constant dense<0.000000e+00> : vector<8x128xf32>
      %28 = vector.multi_reduction <add>, %27, %cst_8 [0] : vector<2x8x128xf32> to vector<8x128xf32>
      %c0_9 = arith.constant 0 : index
      %c0_10 = arith.constant 0 : index
      %c0_11 = arith.constant 0 : index
      %29 = vector.load %arg4[%c0_9, %c0_10, %c0_11] : memref<1x8x128xf32, #tpu.memory_space<vmem>>, vector<1x8x128xf32>
      %30 = vector.shape_cast %28 : vector<8x128xf32> to vector<1x8x128xf32>
      %31 = arith.addf %29, %30 : vector<1x8x128xf32>
      %c0_12 = arith.constant 0 : index
      %c0_13 = arith.constant 0 : index
      %c0_14 = arith.constant 0 : index
      %32 = vector.load %arg4[%c0_12, %c0_13, %c0_14] : memref<1x8x128xf32, #tpu.memory_space<vmem>>, vector<1x8x128xf32>
      tpu.vector_store %arg4[%c0_12, %c0_13, %c0_14], %31 {strides = array<i32>} : memref<1x8x128xf32, #tpu.memory_space<vmem>>, vector<1x8x128xf32>,
    } else {
    }
    return
  }
  func.func @transform_0(%arg0: i32, %arg1: i32) -> (i32, i32) {
    %c1_i32 = arith.constant 1 : i32
    %0 = arith.muli %arg0, %c1_i32 : i32
    %1 = arith.addi %0, %arg1 : i32
    %c0_i32 = arith.constant 0 : i32
    %2 = arith.minsi %1, %c0_i32 : i32
    %c0_i32_0 = arith.constant 0 : i32
    %c0_i32_1 = arith.constant 0 : i32
    return %2, %c0_i32_0 : i32, i32
  }
  func.func @transform_1(%arg0: i32, %arg1: i32) -> (i32, i32) {
    %c1_i32 = arith.constant 1 : i32
    %0 = arith.muli %arg0, %c1_i32 : i32
    %1 = arith.addi %0, %arg1 : i32
    %c0_i32 = arith.constant 0 : i32
    %2 = arith.minsi %1, %c0_i32 : i32
    %c0_i32_0 = arith.constant 0 : i32
    %c0_i32_1 = arith.constant 0 : i32
    return %2, %c0_i32_0 : i32, i32
  }
  func.func @transform_2(%arg0: i32, %arg1: i32) -> (i32, i32, i32) {
    %c0_i32 = arith.constant 0 : i32
    %c0_i32_0 = arith.constant 0 : i32
    %c0_i32_1 = arith.constant 0 : i32
    return %arg0, %c0_i32, %c0_i32_0 : i32, i32, i32
  }
}

</mosaic_0001>

<bundles_post_ra>
// kernel: tpu_custom_call.1
= control target key start
LH: loop header
LB: loop body
LE: loop exit
PB: predicated region body
PF: predicated region fallthrough
CT: control target
= control target key end

     0   :  { %7 = vsyncpa [#allocation3], 0  ;;  %s274_s0 = inlined_call_operand.hbm [shape: f32[16,128], index: 0, kind: input, shape index: {}]   ;;  %s275_s1 = inlined_call_operand.hbm [shape: f32[16,128], index: 1, kind: input, shape index: {}]   ;;  %s276_s2 = inlined_call_operand.hbm [shape: f32[1,8,128], index: 2, kind: output, shape index: {}]  }
   0x1   :  { %8 = vsyncpa [#allocation6], 0 }
   0x2   :  { %9 = vsyncpa [#allocation4], 0  ;;  %s217_s9 = smov [#allocation2]   ;;  %s145_s13 = scalar_lea.hbm %s274_s0, 256 }
   0x3   :  { %s21_s10 = sshll.u32 %s217_s9, 4  ;;  %p146_p0 = scmp.ne.s32.totalorder %s274_s0, %s145_s13  ;;  %s22_s10 = int_to_ptr.vmem [resolvable:$true] %s21_s10 }
   0x4   :  { %p149_p1 = scmp.lt.u32.totalorder %s145_s13, %s274_s0 }
   0x6   :  { %p151_p2 = pnand %p149_p1, %p146_p0 }
   0x8   :  { %154 = shalt.err (!%p151_p2)
}
   0x9   :  { %s155_s18 = scalar_lea.vmem %s22_s10, 256  ;;  %p160_p4 = scmp.lt.s32.totalorder %s22_s10, %s22_s10 }
   0xa   :  { %p156_p3 = scmp.ne.s32.totalorder %s22_s10, %s155_s18  ;;  %p161_p5 = scmp.lt.s32.totalorder %s155_s18, %s155_s18 }
   0xc   :  { %p162_p6 = por %p161_p5, %p160_p4 }
   0xe   :  { %p163_p7 = pnand %p162_p6, %p156_p3 }
  0x10   :  { %166 = shalt.err (!%p163_p7)
}
  0x11   :  { %s218_s19 = smov 128   ;;  %s219_s20 = smov 8  }
  0x12   :  { %27 = dma.hbm_to_vmem [thread:$0]  %s274_s0, 256, %s22_s10, [#allocation3], %s218_s19, %s218_s19, %s219_s20  }
  0x13   :  { %s220_s23 = smov [#allocation5]   ;;  %s167_s27 = scalar_lea.hbm %s275_s1, 256 }
  0x14   :  { %s39_s24 = sshll.u32 %s220_s23, 4  ;;  %p168_p8 = scmp.ne.s32.totalorder %s275_s1, %s167_s27  ;;  %s40_s24 = int_to_ptr.vmem [resolvable:$true] %s39_s24 }
  0x15   :  { %p171_p9 = scmp.lt.u32.totalorder %s167_s27, %s275_s1 }
  0x17   :  { %p173_p10 = pnand %p171_p9, %p168_p8 }
  0x19   :  { %176 = shalt.err (!%p173_p10)
}
  0x1a   :  { %s177_s4 = scalar_lea.vmem %s40_s24, 256  ;;  %p182_p12 = scmp.lt.s32.totalorder %s40_s24, %s40_s24 }
  0x1b   :  { %p178_p11 = scmp.ne.s32.totalorder %s40_s24, %s177_s4  ;;  %p183_p13 = scmp.lt.s32.totalorder %s177_s4, %s177_s4 }
  0x1d   :  { %p184_p0 = por %p183_p13, %p182_p12 }
  0x1f   :  { %p185_p1 = pnand %p184_p0, %p178_p11 }
  0x21   :  { %188 = shalt.err (!%p185_p1)
}
  0x22   :  { %45 = dma.hbm_to_vmem [thread:$0]  %s275_s1, 256, %s40_s24, [#allocation6], %s218_s19, %s218_s19, %s219_s20  }
  0x23   :  { %211 = dma.done.wait [#allocation3], 256  }
  0x24   :  { %212 = vsyncadd [#allocation3], 4294967040 }
  0x25   :  { %213 = dma.done.wait [#allocation6], 256  }
  0x26   :  { %214 = vsyncadd [#allocation6], 4294967040  ;;  %v66_v0 = vld [vmem:[#allocation2] sm:$0xff]  ;;  %v67_v1 = vld [vmem:[#allocation2 + $0x8] sm:$0xff]  ;;  %v221_v4 = vmov 0.0   ;;  %s222_s6 = smov [#allocation7]  }
  0x27   :  { %v74_v2 = vld [vmem:[#allocation5] sm:$0xff]  ;;  %vm68_vm0 = vcmp.gt.f32.partialorder %v66_v0, 0.5  ;;  %vm69_vm1 = vcmp.gt.f32.partialorder %v67_v1, 0.5  ;;  %v75_v3 = vld [vmem:[#allocation5 + $0x8] sm:$0xff]  ;;  %s119_s7 = sshll.u32 %s222_s6, 4  ;;  %s120_s7 = int_to_ptr.vmem [resolvable:$true] %s119_s7 }
  0x28   :  { %v133_v5 = vsel %vm68_vm0, 1.0, %v221_v4  ;;  %v134_v6 = vsel %vm69_vm1, 1.0, %v221_v4  ;;  %s189_s1 = scalar_lea.vmem %s120_s7, 128  ;;  %p194_p3 = scmp.lt.s32.totalorder %s120_s7, %s120_s7 }
  0x29   :  { %vm76_vm2 = vcmp.eq.f32.partialorder %v74_v2, %v133_v5  ;;  %vm77_vm3 = vcmp.eq.f32.partialorder %v75_v3, %v134_v6  ;;  %p190_p2 = scmp.ne.s32.totalorder %s120_s7, %s189_s1  ;;  %p195_p4 = scmp.lt.s32.totalorder %s189_s1, %s189_s1 }
  0x2a   :  { %v137_v7 = vsel %vm76_vm2, 1.0, %v221_v4  ;;  %v138_v8 = vsel %vm77_vm3, 1.0, %v221_v4 }
  0x2b   :  { %v109_v9 = vadd.f32 %v138_v8, %v137_v7  ;;  %p196_p5 = por %p195_p4, %p194_p3 }
  0x2d   :  { %112 = vst [vmem:[#allocation7] sm:$0xff] %v109_v9  ;;  %p197_p6 = pnand %p196_p5, %p190_p2 }
  0x2f   :  { %200 = shalt.err (!%p197_p6)
}
  0x30   :  { %s201_s10 = scalar_lea.hbm %s276_s2, 128 }
  0x31   :  { %p202_p7 = scmp.ne.s32.totalorder %s276_s2, %s201_s10  ;;  %p205_p8 = scmp.lt.u32.totalorder %s201_s10, %s276_s2 }
  0x33   :  { %p207_p9 = pnand %p205_p8, %p202_p7 }
  0x35   :  { %210 = shalt.err (!%p207_p9)
}
  0x36   :  { %122 = dma.vmem_to_hbm [thread:$0]  %s120_s7, 128, %s276_s2, [#allocation4]  }
  0x37   :  { %215 = dma.done.wait [#allocation4], 128  }
  0x38   :  { %216 = vsyncadd [#allocation4], 4294967168 }
  0x39   :  { %126 = vsyncpa [#allocation3], 1 }
  0x3a   :  { %127 = vsyncpa [#allocation6], 1 }
  0x3b   :  { %128 = vsyncpa [#allocation4], 1 }

</bundles_post_ra>
